<compile_context>
chip_gen: v6e
topology: v6e:2x2x1
jax: 0.10.0
libtpu: 0.0.40
codegen_flags: <defaults>
</compile_context>

<pallas_src>
import functools
import math

import jax
import jax.numpy as jnp
from jax import lax
from jax.experimental import pallas as pl
from jax.experimental.pallas import tpu as pltpu


def _round_up(x, m):
    return (x + m - 1) // m * m


def _vmem_capacity_bytes():
    """Physical VMEM per TensorCore (trace/py-time query, with safe fallback)."""
    try:
        return int(pltpu.get_tpu_info().vmem_capacity_bytes)
    except Exception:
        return 64 * 1024 * 1024  # conservative floor (v7x per-TC VMEM)


# ----------------------------------------------------------------------------
# Kernels
# ----------------------------------------------------------------------------
def _scaled_linear_resident_kernel(x_ref, w_ref, b_ref, o_ref, *, scale):
    """Fast path: whole (padded) weight resident in VMEM, grid over M only.

    Ref shapes:
      x_ref : (tm, Kp)   activations (bf16 or f32)
      w_ref : (Kp, Np)   pre-transposed weight, constant across the grid
      b_ref : (1,  Np)   bias (f32)
      o_ref : (tm, Np)   f32 output tile
    """
    acc = jnp.dot(x_ref[...], w_ref[...], preferred_element_type=jnp.float32)
    o_ref[...] = (acc * scale + b_ref[...]).astype(o_ref.dtype)


def _scaled_linear_tiled_kernel(x_ref, w_ref, b_ref, o_ref, *, scale):
    """Tiled (M, N, K) path; K is the last ("arbitrary") grid axis.

    Accumulates directly into the f32 output ref (resident across K), so no
    separate VMEM accumulator scratch and no finalize copy are needed.
    """
    k = pl.program_id(2)

    @pl.when(k == 0)
    def _init():
        o_ref[...] = jnp.zeros_like(o_ref)

    o_ref[...] += jnp.dot(x_ref[...], w_ref[...],
                          preferred_element_type=jnp.float32)

    @pl.when(k == pl.num_programs(2) - 1)
    def _finalize():
        # Scale folded here (linear in the accumulation, so end-scaling is exact).
        o_ref[...] = o_ref[...] * scale + b_ref[...]


# ----------------------------------------------------------------------------
# One-time operand preparation (cache this across forward calls)
# ----------------------------------------------------------------------------
def prepare_scaled_linear(weight, bias, *, compute_dtype=jnp.bfloat16,
                          tn=256, tk=1024):
    """Transpose + cast + pad the static operands once.

    Returns a dict usable by scaled_linear_apply(). The sqrt(2/dim_in) scale
    is NOT applied to the weight; it is a compile-time constant applied in the
    kernel epilogue.
    """
    dim_out, dim_in = weight.shape

    # Clamp tiles to the (hardware-aligned) problem size, then pad to a
    # multiple so tiles evenly divide the padded extents.
    tn = min(tn, _round_up(dim_out, 128))
    tk = min(tk, _round_up(dim_in, 128))
    kp = _round_up(dim_in, tk)
    np_ = _round_up(dim_out, tn)

    # dim_out -> lanes inside the kernel (lane-dense output stores).
    w = weight.T.astype(compute_dtype)
    if (kp, np_) != w.shape:
        w = jnp.pad(w, ((0, kp - dim_in), (0, np_ - dim_out)))

    b = bias.astype(jnp.float32).reshape(1, dim_out)
    if np_ != dim_out:
        b = jnp.pad(b, ((0, 0), (0, np_ - dim_out)))

    return {
        "w": w,                      # (Kp, Np), compute_dtype
        "b": b,                      # (1,  Np), f32
        "scale": math.sqrt(2.0 / dim_in),
        "dim_in": dim_in,
        "dim_out": dim_out,
        "tn": tn,
        "tk": tk,
    }


# ----------------------------------------------------------------------------
# Forward
# ----------------------------------------------------------------------------
def scaled_linear_apply(x, prep, *, tm=256,
                        small_path_max_w_bytes=8 * 1024 * 1024):
    """y = x @ (weight * sqrt(2/dim_in)).T + bias, using prepared operands."""
    dim_in, dim_out = prep["dim_in"], prep["dim_out"]
    tn, tk = prep["tn"], prep["tk"]
    w, b, scale = prep["w"], prep["b"], prep["scale"]
    kp, np_ = w.shape
    itemsize = jnp.dtype(w.dtype).itemsize

    lead = x.shape[:-1]
    x2 = x.reshape(-1, dim_in).astype(w.dtype)
    m = x2.shape[0]

    # bf16 packs 16 rows per vreg sublane group; keep tm >= 16 for bf16.
    sub_min = 16 if itemsize < 4 else 8
    tm = max(sub_min, min(tm, _round_up(m, sub_min)))
    mp = _round_up(m, tm)

    # Pad activations only if actually needed (K-pad keeps the reduction exact;
    # padded M rows are sliced off below).
    if (mp, kp) != x2.shape:
        x2 = jnp.pad(x2, ((0, mp - m), (0, kp - dim_in)))

    vmem_cap = _vmem_capacity_bytes()
    vmem_limit = min(vmem_cap * 3 // 4, 100 * 1024 * 1024)

    # Fast path: keep W fully resident, grid over M only.
    w_bytes = kp * np_ * itemsize
    resident_budget = (2 * w_bytes                 # W (budget double-buffering)
                       + 2 * mp_tile_bytes(tm, kp, itemsize)   # x tiles
                       + 2 * tm * np_ * 4          # f32 out tiles
                       + np_ * 4)                  # bias
    use_resident = (w_bytes <= small_path_max_w_bytes
                    and resident_budget <= int(vmem_limit * 0.8))

    if use_resident:
        kernel = functools.partial(_scaled_linear_resident_kernel, scale=scale)
        out = pl.pallas_call(
            kernel,
            out_shape=jax.ShapeDtypeStruct((mp, np_), jnp.float32),
            grid_spec=pltpu.PrefetchScalarGridSpec(
                num_scalar_prefetch=0,
                grid=(mp // tm,),
                in_specs=[
                    pl.BlockSpec((tm, kp), lambda i: (i, 0)),
                    pl.BlockSpec((kp, np_), lambda i: (0, 0)),  # resident
                    pl.BlockSpec((1, np_), lambda i: (0, 0)),
                ],
                out_specs=pl.BlockSpec((tm, np_), lambda i: (i, 0)),
            ),
            compiler_params=pltpu.CompilerParams(
                dimension_semantics=("parallel",),
                vmem_limit_bytes=vmem_limit,
            ),
        )(x2, w, b)
    else:
        kernel = functools.partial(_scaled_linear_tiled_kernel, scale=scale)
        out = pl.pallas_call(
            kernel,
            out_shape=jax.ShapeDtypeStruct((mp, np_), jnp.float32),
            grid_spec=pltpu.PrefetchScalarGridSpec(
                num_scalar_prefetch=0,
                grid=(mp // tm, np_ // tn, kp // tk),
                in_specs=[
                    pl.BlockSpec((tm, tk), lambda i, j, k: (i, k)),
                    pl.BlockSpec((tk, tn), lambda i, j, k: (k, j)),
                    pl.BlockSpec((1, tn), lambda i, j, k: (0, j)),
                ],
                out_specs=pl.BlockSpec((tm, tn), lambda i, j, k: (i, j)),
            ),
            compiler_params=pltpu.CompilerParams(
                dimension_semantics=("parallel", "parallel", "arbitrary"),
                vmem_limit_bytes=vmem_limit,
            ),
        )(x2, w, b)

    return out[:m, :dim_out].reshape(*lead, dim_out)


def mp_tile_bytes(tm, kp, itemsize):
    return tm * kp * itemsize


@functools.partial(jax.jit, static_argnames=("compute_dtype", "tm", "tn", "tk",
                                             "small_path_max_w_bytes"))
def scaled_linear(x, weight, bias, *, compute_dtype=jnp.bfloat16,
                  tm=256, tn=256, tk=1024,
                  small_path_max_w_bytes=8 * 1024 * 1024):
    """Convenience wrapper (prep + apply). For repeated forwards, call
    prepare_scaled_linear() once and reuse the result with scaled_linear_apply().
    """
    prep = prepare_scaled_linear(weight, bias, compute_dtype=compute_dtype,
                                 tn=tn, tk=tk)
    return scaled_linear_apply(x, prep, tm=tm,
                               small_path_max_w_bytes=small_path_max_w_bytes)


# ----------------------------------------------------------------------------
# Module-faithful init + pure-JAX reference
# ----------------------------------------------------------------------------
def init_scaled_linear_params(key, dim_in, dim_out):
    """ScaledLinear.__init__: weight ~ N(0, 1), bias = 0 (module-faithful)."""
    return {
        "weight": jax.random.normal(key, (dim_out, dim_in), jnp.float32),
        "bias": jnp.zeros((dim_out,), jnp.float32),
    }


def scaled_linear_reference(x, weight, bias):
    """Pure-JAX reference replicating the PyTorch forward (for validation)."""
    dim_in = weight.shape[1]
    w_eff = weight * math.sqrt(2.0 / dim_in)
    return jnp.einsum("...k,nk->...n", x, w_eff,
                      precision=lax.Precision.HIGHEST) + bias


if __name__ == "__main__":
    key = jax.random.PRNGKey(0)
    kx, kp, kx2, kw2, kb2 = jax.random.split(key, 5)

    # --- Test 1: module-faithful small case (zero bias), f32 operands,
    #     weight-resident fast path. x: (batch=2, seq=8, dim_in=32) -> 64.
    batch, seq, dim_in, dim_out = 2, 8, 32, 64
    x = jax.random.normal(kx, (batch, seq, dim_in), jnp.float32)
    params = init_scaled_linear_params(kp, dim_in, dim_out)

    out = jax.block_until_ready(
        scaled_linear(x, params["weight"], params["bias"],
                      compute_dtype=jnp.float32))
    ref = scaled_linear_reference(x, params["weight"], params["bias"])
    assert out.shape == (batch, seq, dim_out), out.shape
    assert bool(jnp.allclose(out, ref, atol=1e-3, rtol=1e-3)), \
        "f32 Pallas output does not match JAX reference"

    # --- Test 2: non-tile-aligned case, bf16 operands (f32 accumulation),
    #     nonzero bias, and force the tiled K-reduction path
    #     (small_path_max_w_bytes=0) to exercise init/accumulate/finalize.
    batch2, seq2, dim_in2, dim_out2 = 4, 60, 384, 200
    x2 = jax.random.normal(kx2, (batch2, seq2, dim_in2), jnp.float32)
    w2 = jax.random.normal(kw2, (dim_out2, dim_in2), jnp.float32)
    b2 = 0.1 * jax.random.normal(kb2, (dim_out2,), jnp.float32)

    out2 = jax.block_until_ready(
        scaled_linear(x2, w2, b2, compute_dtype=jnp.bfloat16,
                      tn=128, tk=128, small_path_max_w_bytes=0))
    ref2 = scaled_linear_reference(x2, w2, b2)
    assert out2.shape == (batch2, seq2, dim_out2), out2.shape
    assert bool(jnp.allclose(out2, ref2, atol=5e-2, rtol=5e-2)), \
        "bf16 Pallas output does not match JAX reference"

    print("KERNEL_OK")
</pallas_src>

<mosaic_0001>
module attributes {stable_mosaic.version = 11 : i64} {
  func.func @_scaled_linear_resident_kernel(%arg0: i32, %arg1: memref<16x128xf32, #tpu.memory_space<vmem>>, %arg2: memref<128x128xf32, #tpu.memory_space<vmem>>, %arg3: memref<1x128xf32, #tpu.memory_space<vmem>>, %arg4: memref<16x128xf32, #tpu.memory_space<vmem>>) attributes {dimension_semantics = [#tpu.dimension_semantics<parallel>], iteration_bounds = array<i64: 1>, scalar_prefetch = 0 : i64, scratch_operands = 0 : i64, tpu.core_type = #tpu.core_type<tc>, window_params = [{transform_indices = @transform_0, window_bounds = array<i64: 16, 128>}, {pipeline_mode = #tpu.pipeline_mode<synchronous>, transform_indices = @transform_1, window_bounds = array<i64: 128, 128>}, {pipeline_mode = #tpu.pipeline_mode<synchronous>, transform_indices = @transform_2, window_bounds = array<i64: 1, 128>}, {transform_indices = @transform_3, window_bounds = array<i64: 16, 128>}]} {
    %c0 = arith.constant 0 : index
    %c0_0 = arith.constant 0 : index
    %0 = vector.load %arg1[%c0, %c0_0] : memref<16x128xf32, #tpu.memory_space<vmem>>, vector<16x128xf32>
    %c0_1 = arith.constant 0 : index
    %c0_2 = arith.constant 0 : index
    %1 = vector.load %arg2[%c0_1, %c0_2] : memref<128x128xf32, #tpu.memory_space<vmem>>, vector<128x128xf32>
    %cst = arith.constant dense<0.000000e+00> : vector<16x128xf32>
    %2 = tpu.matmul %0, %1, %cst {dimension_numbers = #tpu.dot_dimension_numbers<[1], [0], [0], [1], [0, 0, 1, 1], [], []>} : vector<16x128xf32>, vector<128x128xf32>, vector<16x128xf32> -> vector<16x128xf32>
    %cst_3 = arith.constant 2.500000e-01 : f32
    %3 = vector.broadcast %cst_3 : f32 to vector<16x128xf32>
    %4 = arith.mulf %2, %3 : vector<16x128xf32>
    %c0_4 = arith.constant 0 : index
    %c0_5 = arith.constant 0 : index
    %5 = vector.load %arg3[%c0_4, %c0_5] : memref<1x128xf32, #tpu.memory_space<vmem>>, vector<1x128xf32>
    %6 = vector.broadcast %5 : vector<1x128xf32> to vector<16x128xf32>
    %7 = arith.addf %4, %6 : vector<16x128xf32>
    %c0_6 = arith.constant 0 : index
    %c0_7 = arith.constant 0 : index
    %8 = vector.load %arg4[%c0_6, %c0_7] : memref<16x128xf32, #tpu.memory_space<vmem>>, vector<16x128xf32>
    tpu.vector_store %arg4[%c0_6, %c0_7], %7 {strides = array<i32>} : memref<16x128xf32, #tpu.memory_space<vmem>>, vector<16x128xf32>,
    return
  }
  func.func @transform_0(%arg0: i32) -> (i32, i32) {
    %c0_i32 = arith.constant 0 : i32
    %c0_i32_0 = arith.constant 0 : i32
    return %arg0, %c0_i32 : i32, i32
  }
  func.func @transform_1(%arg0: i32) -> (i32, i32) {
    %c0_i32 = arith.constant 0 : i32
    %c0_i32_0 = arith.constant 0 : i32
    %c0_i32_1 = arith.constant 0 : i32
    return %c0_i32, %c0_i32_0 : i32, i32
  }
  func.func @transform_2(%arg0: i32) -> (i32, i32) {
    %c0_i32 = arith.constant 0 : i32
    %c0_i32_0 = arith.constant 0 : i32
    %c0_i32_1 = arith.constant 0 : i32
    return %c0_i32, %c0_i32_0 : i32, i32
  }
  func.func @transform_3(%arg0: i32) -> (i32, i32) {
    %c0_i32 = arith.constant 0 : i32
    %c0_i32_0 = arith.constant 0 : i32
    return %arg0, %c0_i32 : i32, i32
  }
}

</mosaic_0001>

<bundles_post_ra>
// kernel: scaled_linear.1
= control target key start
LH: loop header
LB: loop body
LE: loop exit
PB: predicated region body
PF: predicated region fallthrough
CT: control target
= control target key end

     0   :  { %s261_s1 = inlined_call_operand.vmem [shape: f32[128,128], index: 1, kind: input, shape index: {}]   ;;  %s262_s0 = inlined_call_operand.vmem [shape: f32[16,128], index: 0, kind: input, shape index: {}]   ;;  %s263_s2 = inlined_call_operand.vmem [shape: f32[1,128], index: 2, kind: input, shape index: {}]   ;;  %s264_s3 = inlined_call_operand.vmem [shape: f32[16,128], index: 3, kind: output, shape index: {}]  }
   0x1   :  { %v31_v0 = vld [vmem:[%s261_s1 + $0x78] sm:$0xff]  ;;  %v30_v1 = vld [vmem:[%s261_s1 + $0x70] sm:$0xff]  ;;  %v29_v2 = vld [vmem:[%s261_s1 + $0x68] sm:$0xff] }
   0x2   :  { %143 = vmatprep.subr.mxu0 %v31_v0  ;;  %v28_v3 = vld [vmem:[%s261_s1 + $0x60] sm:$0xff]  ;;  %v27_v5 = vld [vmem:[%s261_s1 + $0x58] sm:$0xff]  ;;  %v26_v6 = vld [vmem:[%s261_s1 + $0x50] sm:$0xff] }
   0x3   :  { %144 = vmatpush3.msra.mxu0 %v31_v0  ;;  %v14_v4 = vld [vmem:[%s262_s0] sm:$0xff]  ;;  %v25_v7 = vld [vmem:[%s261_s1 + $0x48] sm:$0xff]  ;;  %v23_v9 = vld [vmem:[%s261_s1 + $0x38] sm:$0xff] }
   0x4   :  { %145 = vmatprep.subr.mxu0 %v30_v1  ;;  %175 = vmatprep.mubr.f32.mxu0 %v14_v4  ;;  %v24_v8 = vld [vmem:[%s261_s1 + $0x40] sm:$0xff]  ;;  %v22_v10 = vld [vmem:[%s261_s1 + $0x30] sm:$0xff]  ;;  %v21_v11 = vld [vmem:[%s261_s1 + $0x28] sm:$0xff] }
   0x5   :  { %146 = vmatpush3.msra.mxu0 %v30_v1  ;;  %v20_v12 = vld [vmem:[%s261_s1 + $0x20] sm:$0xff]  ;;  %v19_v13 = vld [vmem:[%s261_s1 + $0x18] sm:$0xff]  ;;  %v18_v14 = vld [vmem:[%s261_s1 + $0x10] sm:$0xff] }
   0x6   :  { %147 = vmatprep.subr.mxu0 %v29_v2  ;;  %v17_v15 = vld [vmem:[%s261_s1 + $0x8] sm:$0xff]  ;;  %v16_v16 = vld [vmem:[%s261_s1] sm:$0xff] }
   0x7   :  { %148 = vmatpush3.msra.mxu0 %v29_v2  ;;  %v15_v17 = vld [vmem:[%s262_s0 + $0x8] sm:$0xff]  ;;  %v124_v19 = vld [vmem:[%s263_s2] ss:$0 sm:$0xff] }
   0x8   :  { %149 = vmatprep.subr.mxu0 %v28_v3 }
   0x9   :  { %150 = vmatpush3.msra.mxu0 %v28_v3 }
   0xa   :  { %151 = vmatprep.subr.mxu0 %v27_v5 }
   0xb   :  { %152 = vmatpush3.msra.mxu0 %v27_v5 }
   0xc   :  { %153 = vmatprep.subr.mxu0 %v26_v6 }
   0xd   :  { %154 = vmatpush3.msra.mxu0 %v26_v6 }
   0xe   :  { %155 = vmatprep.subr.mxu0 %v25_v7 }
   0xf   :  { %156 = vmatpush3.msra.mxu0 %v25_v7 }
  0x10   :  { %157 = vmatprep.subr.mxu0 %v24_v8 }
  0x11   :  { %158 = vmatpush3.msra.mxu0 %v24_v8 }
  0x12   :  { %159 = vmatprep.subr.mxu0 %v23_v9 }
  0x13   :  { %160 = vmatpush3.msra.mxu0 %v23_v9 }
  0x14   :  { %161 = vmatprep.subr.mxu0 %v22_v10 }
  0x15   :  { %162 = vmatpush3.msra.mxu0 %v22_v10 }
  0x16   :  { %163 = vmatprep.subr.mxu0 %v21_v11 }
  0x17   :  { %164 = vmatpush3.msra.mxu0 %v21_v11 }
  0x18   :  { %165 = vmatprep.subr.mxu0 %v20_v12 }
  0x19   :  { %166 = vmatpush3.msra.mxu0 %v20_v12 }
  0x1a   :  { %167 = vmatprep.subr.mxu0 %v19_v13 }
  0x1b   :  { %168 = vmatpush3.msra.mxu0 %v19_v13 }
  0x1c   :  { %169 = vmatprep.subr.mxu0 %v18_v14 }
  0x1d   :  { %170 = vmatpush3.msra.mxu0 %v18_v14 }
  0x1e   :  { %171 = vmatprep.subr.mxu0 %v17_v15 }
  0x1f   :  { %172 = vmatpush3.msra.mxu0 %v17_v15 }
  0x20   :  { %173 = vmatprep.subr.mxu0 %v16_v16 }
  0x21   :  { %174 = vmatpush3.msra.mxu0 %v16_v16 }
  0x22   :  { %176 = vmatmul.mubr.f32.vlgmr.msra.gmra.mxu0 %v15_v17 }
  0xe2   :  { %v177_v18 = vpop.f32.mrf.mxu0 }
  0xe3   :  { %v108_v20 = vmul.f32 0.25, %v177_v18 }
  0xe4   :  { %v98_v21 = vpop.f32.mrf.mxu0 }
  0xe5   :  { %v117_v22 = vadd.f32 %v124_v19, %v108_v20  ;;  %v107_v23 = vmul.f32 0.25, %v98_v21 }
  0xe7   :  { %119 = vst [vmem:[%s264_s3 + $0x8] sm:$0xff] %v117_v22  ;;  %v116_v24 = vadd.f32 %v124_v19, %v107_v23 }
  0xe9   :  { %118 = vst [vmem:[%s264_s3] sm:$0xff] %v116_v24 }

</bundles_post_ra>
